<compile_context>
chip_gen: v6e
topology: v6e:2x2x1
jax: 0.10.0
libtpu: 0.0.40
codegen_flags: <defaults>
</compile_context>

<pallas_src>
import math

import jax
import jax.numpy as jnp
from jax import lax
from jax.experimental import pallas as pl
from jax.experimental.pallas import tpu as pltpu


# ------------------------------ fused kernel ---------------------------------
def _make_fused_mha_kernel(num_heads):
    def kernel(x_ref, wqkv_ref, wproj_ref, bproj_ref, o_ref, cat_ref):
        # x_ref    : (1, T, C)  compute dtype (bf16 in production, f32 for checks)
        # wqkv_ref : (C, 3*C)   [q | k | v]; head h at cols h*H:(h+1)*H of each third;
        #                       1/sqrt(n_embd) already folded into the q third.
        # wproj_ref: (C, C)     compute dtype
        # bproj_ref: (1, C)     f32
        # o_ref    : (1, T, C)  original input dtype
        # cat_ref  : (T, C)     VMEM scratch = concatenated head outputs
        x = x_ref[0]                                              # (T, C)
        T, C = x.shape
        H = C // num_heads
        cd = x.dtype                                              # MXU operand dtype

        # Single wide MXU matmul for all q/k/v of all heads, f32 accumulation.
        qkv = jnp.dot(x, wqkv_ref[...],
                      preferred_element_type=jnp.float32)         # (T, 3*C) f32
        q = qkv[:, :C]
        k = qkv[:, C:2 * C]
        v = qkv[:, 2 * C:]

        # Causal mask for one head's (T, T) score tile (finite -> padding-safe).
        row = lax.broadcasted_iota(jnp.int32, (T, T), 0)
        col = lax.broadcasted_iota(jnp.int32, (T, T), 1)
        causal = row >= col
        neg_big = jnp.float32(-1e30)

        # --- per-head scores, stacked along the sublane axis -------------------
        s_list = []
        for h in range(num_heads):                                # static unroll
            sl = slice(h * H, (h + 1) * H)
            qh = q[:, sl].astype(cd)
            kh = k[:, sl].astype(cd)
            # q @ k^T without materializing k.T: contract the last axes directly.
            s = lax.dot_general(qh, kh, (((1,), (1,)), ((), ())),
                                preferred_element_type=jnp.float32)   # (T, T) f32
            s_list.append(jnp.where(causal, s, neg_big))
        s_all = jnp.concatenate(s_list, axis=0)                   # (NH*T, T) f32

        # --- ONE stacked softmax pass (f32; full-vreg XLU reduce + EUP exp) ----
        m = jnp.max(s_all, axis=-1, keepdims=True)
        p_all = jnp.exp(s_all - m)                                # unnormalized
        denom = jnp.sum(p_all, axis=-1, keepdims=True)            # (NH*T, 1) f32

        # --- per-head P@V, deferred normalization, write into the concat scratch
        for h in range(num_heads):
            sl = slice(h * H, (h + 1) * H)
            rows = slice(h * T, (h + 1) * T)
            p_h = p_all[rows, :].astype(cd)                       # (T, T)
            v_h = v[:, sl].astype(cd)                             # (T, H)
            oh = jnp.dot(p_h, v_h, preferred_element_type=jnp.float32)  # (T, H) f32
            # Normalize after P@V (T*H elems instead of T*T); EUP approx recip.
            oh = oh * pl.reciprocal(denom[rows, :], approx=True)
            cat_ref[:, sl] = oh.astype(cat_ref.dtype)             # torch.cat order

        # --- output projection (Linear with bias), lane-dense (T, C) store -----
        out = jnp.dot(cat_ref[...], wproj_ref[...],
                      preferred_element_type=jnp.float32) + bproj_ref[...]
        o_ref[0] = out.astype(o_ref.dtype)

    return kernel


# --------------------------------- wrapper ------------------------------------
def multi_head_attention(x, params, *, mxu_dtype=jnp.bfloat16):
    """Full MultiHeadAttention forward (dropout = identity / eval mode).

    mxu_dtype: dtype of the MXU matmul operands (bf16 = production config;
    f32 available for bit-closer parity checks). Softmax math is always f32.
    """
    wq, wk, wv = params["wq"], params["wk"], params["wv"]          # (NH, C, H) each
    w_proj, b_proj = params["w_proj"], params["b_proj"]            # (C, C), (C,)
    B, T, C = x.shape
    NH, _, H = wq.shape
    assert NH * H == C, "num_heads * head_size must equal n_embd"

    # One-time weight layout transform: stack per-head q/k/v into a single
    # (C, 3*C) matrix (head h of each third at columns h*H:(h+1)*H, matching
    # torch.cat), folding the 1/sqrt(n_embd) score scale into the q columns.
    def _stack(w):  # (NH, C, H) -> (C, NH*H)
        return jnp.transpose(w, (1, 0, 2)).reshape(C, NH * H)

    scale = 1.0 / math.sqrt(C)   # NOTE: 1/sqrt(n_embd), matching the reference code
    wqkv = jnp.concatenate([_stack(wq) * scale, _stack(wk), _stack(wv)], axis=-1)

    x_c = x.astype(mxu_dtype)
    wqkv_c = wqkv.astype(mxu_dtype)
    wproj_c = w_proj.astype(mxu_dtype)
    b2 = b_proj.reshape(1, C).astype(jnp.float32)

    # Scoped-VMEM budget: x/out blocks (double-buffered) + weights (double-
    # buffered) + in-kernel intermediates (qkv, stacked scores/probs, scratch).
    isz = jnp.dtype(mxu_dtype).itemsize
    osz = x.dtype.itemsize
    need = (2 * T * C * isz + 2 * T * C * osz                       # x / out blocks
            + 2 * (3 * C * C + C * C) * isz + 2 * C * 4             # weights + bias
            + 3 * T * C * 4 + 2 * NH * T * T * 4                    # qkv, s_all, p_all
            + T * C * isz + T * C * 4)                              # scratch, out tile
    vmem_limit = int(min(max(32 * 1024 * 1024, 2 * need), 64 * 1024 * 1024))

    flops = 2 * B * T * C * (3 * C) + 4 * B * NH * T * T * H + 2 * B * T * C * C
    bytes_accessed = (B * T * C * (isz + osz)
                      + (3 * C * C + C * C) * isz + C * 4)
    cost = pl.CostEstimate(flops=flops,
                           transcendentals=B * NH * T * T,
                           bytes_accessed=bytes_accessed)

    return pl.pallas_call(
        _make_fused_mha_kernel(NH),
        out_shape=jax.ShapeDtypeStruct((B, T, C), x.dtype),
        grid_spec=pltpu.PrefetchScalarGridSpec(
            num_scalar_prefetch=0,
            grid=(B,),                                    # v7x: one step per TensorCore
            in_specs=[
                pl.BlockSpec((1, T, C), lambda b: (b, 0, 0)),
                pl.BlockSpec((C, 3 * C), lambda b: (0, 0)),   # grid-invariant weights
                pl.BlockSpec((C, C), lambda b: (0, 0)),
                pl.BlockSpec((1, C), lambda b: (0, 0)),
            ],
            out_specs=pl.BlockSpec((1, T, C), lambda b: (b, 0, 0)),
            scratch_shapes=[pltpu.VMEM((T, C), mxu_dtype)],   # head-concat scratch
        ),
        compiler_params=pltpu.CompilerParams(
            dimension_semantics=("parallel",),
            vmem_limit_bytes=vmem_limit,
        ),
        cost_estimate=cost,
    )(x_c, wqkv_c, wproj_c, b2)


# --------------------------------- reference -----------------------------------
def multi_head_attention_ref(x, params):
    wq, wk, wv = params["wq"], params["wk"], params["wv"]
    B, T, C = x.shape
    q = jnp.einsum("btc,hcd->bhtd", x, wq)
    k = jnp.einsum("btc,hcd->bhtd", x, wk)
    v = jnp.einsum("btc,hcd->bhtd", x, wv)
    scores = jnp.einsum("bhtd,bhsd->bhts", q, k) / jnp.sqrt(jnp.float32(C))
    mask = jnp.tril(jnp.ones((T, T), dtype=bool))
    scores = jnp.where(mask, scores, -jnp.inf)
    wei = jax.nn.softmax(scores, axis=-1)
    out = jnp.einsum("bhts,bhsd->bhtd", wei, v)
    concat = jnp.transpose(out, (0, 2, 1, 3)).reshape(B, T, -1)
    return concat @ params["w_proj"] + params["b_proj"]


if __name__ == "__main__":
    # Small shapes consistent with the module (n_embd divisible by num_heads).
    # C = 128 keeps the output store lane-dense (full 128-lane vst), like the
    # real module's n_embd = 384 would be.
    B, T, C = 2, 16, 128
    NUM_HEADS = 4
    HEAD_SIZE = C // NUM_HEADS

    key = jax.random.PRNGKey(0)
    kx, kq, kk, kv, kw, kb = jax.random.split(key, 6)

    init = 1.0 / math.sqrt(C)
    x = jax.random.normal(kx, (B, T, C), dtype=jnp.float32)
    params = {
        "wq": jax.random.normal(kq, (NUM_HEADS, C, HEAD_SIZE), jnp.float32) * init,
        "wk": jax.random.normal(kk, (NUM_HEADS, C, HEAD_SIZE), jnp.float32) * init,
        "wv": jax.random.normal(kv, (NUM_HEADS, C, HEAD_SIZE), jnp.float32) * init,
        "w_proj": jax.random.normal(kw, (C, C), jnp.float32) * init,
        "b_proj": jax.random.normal(kb, (C,), jnp.float32) * init,
    }

    ref = multi_head_attention_ref(x, params)

    # 1) Exact-semantics check: f32 MXU operands; only the EUP approx reciprocal
    #    deviates from the pure-JAX reference.
    out_f32 = jax.block_until_ready(
        multi_head_attention(x, params, mxu_dtype=jnp.float32))
    assert out_f32.shape == (B, T, C), out_f32.shape
    err_f32 = float(jnp.max(jnp.abs(out_f32 - ref)))
    assert err_f32 < 5e-3, f"f32 max abs err {err_f32}"

    # 2) Production config: bf16 MXU operands, f32 softmax/accumulation.
    #    Tolerance loosened for bf16 operand rounding (outputs are O(0.4)).
    out_bf16 = jax.block_until_ready(
        multi_head_attention(x, params, mxu_dtype=jnp.bfloat16))
    assert out_bf16.shape == (B, T, C), out_bf16.shape
    err_bf16 = float(jnp.max(jnp.abs(out_bf16 - ref)))
    assert err_bf16 < 4e-2, f"bf16 max abs err {err_bf16}"

    print("KERNEL_OK")
</pallas_src>

<mosaic_0001>
module attributes {stable_mosaic.version = 11 : i64} {
  func.func @kernel(%arg0: i32, %arg1: memref<1x16x128xf32, #tpu.memory_space<vmem>>, %arg2: memref<128x384xf32, #tpu.memory_space<vmem>>, %arg3: memref<128x128xf32, #tpu.memory_space<vmem>>, %arg4: memref<1x128xf32, #tpu.memory_space<vmem>>, %arg5: memref<1x16x128xf32, #tpu.memory_space<vmem>>, %arg6: memref<16x128xf32, #tpu.memory_space<vmem>>) attributes {dimension_semantics = [#tpu.dimension_semantics<parallel>], iteration_bounds = array<i64: 2>, scalar_prefetch = 0 : i64, scratch_operands = 1 : i64, tpu.core_type = #tpu.core_type<tc>, window_params = [{transform_indices = @transform_0, window_bounds = array<i64: 1, 16, 128>}, {pipeline_mode = #tpu.pipeline_mode<synchronous>, transform_indices = @transform_1, window_bounds = array<i64: 128, 384>}, {pipeline_mode = #tpu.pipeline_mode<synchronous>, transform_indices = @transform_2, window_bounds = array<i64: 128, 128>}, {pipeline_mode = #tpu.pipeline_mode<synchronous>, transform_indices = @transform_3, window_bounds = array<i64: 1, 128>}, {transform_indices = @transform_4, window_bounds = array<i64: 1, 16, 128>}]} {
    %c0 = arith.constant 0 : index
    %c0_0 = arith.constant 0 : index
    %c0_1 = arith.constant 0 : index
    %0 = vector.load %arg1[%c0, %c0_0, %c0_1] : memref<1x16x128xf32, #tpu.memory_space<vmem>>, vector<1x16x128xf32>
    %1 = vector.shape_cast %0 : vector<1x16x128xf32> to vector<16x128xf32>
    %c0_2 = arith.constant 0 : index
    %c0_3 = arith.constant 0 : index
    %2 = vector.load %arg2[%c0_2, %c0_3] : memref<128x384xf32, #tpu.memory_space<vmem>>, vector<128x384xf32>
    %cst = arith.constant dense<0.000000e+00> : vector<16x384xf32>
    %3 = tpu.matmul %1, %2, %cst {dimension_numbers = #tpu.dot_dimension_numbers<[1], [0], [0], [1], [0, 0, 1, 1], [], []>} : vector<16x128xf32>, vector<128x384xf32>, vector<16x384xf32> -> vector<16x384xf32>
    %4 = vector.extract_strided_slice %3 {offsets = [0, 0], sizes = [16, 128], strides = [1, 1]} : vector<16x384xf32> to vector<16x128xf32>
    %5 = vector.extract_strided_slice %3 {offsets = [0, 128], sizes = [16, 128], strides = [1, 1]} : vector<16x384xf32> to vector<16x128xf32>
    %6 = vector.extract_strided_slice %3 {offsets = [0, 256], sizes = [16, 128], strides = [1, 1]} : vector<16x384xf32> to vector<16x128xf32>
    %7 = tpu.iota {dimensions = array<i32: 0>} : vector<16x16xi32>
    %8 = tpu.iota {dimensions = array<i32: 1>} : vector<16x16xi32>
    %9 = arith.cmpi sge, %7, %8 : vector<16x16xi32>
    %10 = vector.extract_strided_slice %4 {offsets = [0, 0], sizes = [16, 32], strides = [1, 1]} : vector<16x128xf32> to vector<16x32xf32>
    %11 = vector.extract_strided_slice %5 {offsets = [0, 0], sizes = [16, 32], strides = [1, 1]} : vector<16x128xf32> to vector<16x32xf32>
    %cst_4 = arith.constant dense<0.000000e+00> : vector<16x16xf32>
    %12 = tpu.matmul %10, %11, %cst_4 {dimension_numbers = #tpu.dot_dimension_numbers<[1], [1], [0], [0], [0, 0, 1, 0], [], []>} : vector<16x32xf32>, vector<16x32xf32>, vector<16x16xf32> -> vector<16x16xf32>
    %cst_5 = arith.constant -1.000000e+30 : f32
    %13 = vector.broadcast %cst_5 : f32 to vector<16x16xf32>
    %14 = arith.select %9, %12, %13 : vector<16x16xi1>, vector<16x16xf32>
    %15 = vector.extract_strided_slice %4 {offsets = [0, 32], sizes = [16, 32], strides = [1, 1]} : vector<16x128xf32> to vector<16x32xf32>
    %16 = vector.extract_strided_slice %5 {offsets = [0, 32], sizes = [16, 32], strides = [1, 1]} : vector<16x128xf32> to vector<16x32xf32>
    %cst_6 = arith.constant dense<0.000000e+00> : vector<16x16xf32>
    %17 = tpu.matmul %15, %16, %cst_6 {dimension_numbers = #tpu.dot_dimension_numbers<[1], [1], [0], [0], [0, 0, 1, 0], [], []>} : vector<16x32xf32>, vector<16x32xf32>, vector<16x16xf32> -> vector<16x16xf32>
    %cst_7 = arith.constant -1.000000e+30 : f32
    %18 = vector.broadcast %cst_7 : f32 to vector<16x16xf32>
    %19 = arith.select %9, %17, %18 : vector<16x16xi1>, vector<16x16xf32>
    %20 = vector.extract_strided_slice %4 {offsets = [0, 64], sizes = [16, 32], strides = [1, 1]} : vector<16x128xf32> to vector<16x32xf32>
    %21 = vector.extract_strided_slice %5 {offsets = [0, 64], sizes = [16, 32], strides = [1, 1]} : vector<16x128xf32> to vector<16x32xf32>
    %cst_8 = arith.constant dense<0.000000e+00> : vector<16x16xf32>
    %22 = tpu.matmul %20, %21, %cst_8 {dimension_numbers = #tpu.dot_dimension_numbers<[1], [1], [0], [0], [0, 0, 1, 0], [], []>} : vector<16x32xf32>, vector<16x32xf32>, vector<16x16xf32> -> vector<16x16xf32>
    %cst_9 = arith.constant -1.000000e+30 : f32
    %23 = vector.broadcast %cst_9 : f32 to vector<16x16xf32>
    %24 = arith.select %9, %22, %23 : vector<16x16xi1>, vector<16x16xf32>
    %25 = vector.extract_strided_slice %4 {offsets = [0, 96], sizes = [16, 32], strides = [1, 1]} : vector<16x128xf32> to vector<16x32xf32>
    %26 = vector.extract_strided_slice %5 {offsets = [0, 96], sizes = [16, 32], strides = [1, 1]} : vector<16x128xf32> to vector<16x32xf32>
    %cst_10 = arith.constant dense<0.000000e+00> : vector<16x16xf32>
    %27 = tpu.matmul %25, %26, %cst_10 {dimension_numbers = #tpu.dot_dimension_numbers<[1], [1], [0], [0], [0, 0, 1, 0], [], []>} : vector<16x32xf32>, vector<16x32xf32>, vector<16x16xf32> -> vector<16x16xf32>
    %cst_11 = arith.constant -1.000000e+30 : f32
    %28 = vector.broadcast %cst_11 : f32 to vector<16x16xf32>
    %29 = arith.select %9, %27, %28 : vector<16x16xi1>, vector<16x16xf32>
    %30 = tpu.concatenate %14, %19, %24, %29 in 0 : vector<16x16xf32>, vector<16x16xf32>, vector<16x16xf32>, vector<16x16xf32> -> vector<64x16xf32>
    %cst_12 = arith.constant dense<0xFF800000> : vector<64xf32>
    %31 = vector.multi_reduction <maximumf>, %30, %cst_12 [1] : vector<64x16xf32> to vector<64xf32>
    %32 = vector.shape_cast %31 : vector<64xf32> to vector<64x1xf32>
    %33 = vector.broadcast %32 : vector<64x1xf32> to vector<64x16xf32>
    %34 = arith.subf %30, %33 : vector<64x16xf32>
    %35 = math.exp %34 : vector<64x16xf32>
    %cst_13 = arith.constant dense<0.000000e+00> : vector<64xf32>
    %36 = vector.multi_reduction <add>, %35, %cst_13 [1] : vector<64x16xf32> to vector<64xf32>
    %37 = vector.shape_cast %36 : vector<64xf32> to vector<64x1xf32>
    %38 = vector.extract_strided_slice %35 {offsets = [0, 0], sizes = [16, 16], strides = [1, 1]} : vector<64x16xf32> to vector<16x16xf32>
    %39 = vector.extract_strided_slice %6 {offsets = [0, 0], sizes = [16, 32], strides = [1, 1]} : vector<16x128xf32> to vector<16x32xf32>
    %cst_14 = arith.constant dense<0.000000e+00> : vector<16x32xf32>
    %40 = tpu.matmul %38, %39, %cst_14 {dimension_numbers = #tpu.dot_dimension_numbers<[1], [0], [0], [1], [0, 0, 1, 1], [], []>} : vector<16x16xf32>, vector<16x32xf32>, vector<16x32xf32> -> vector<16x32xf32>
    %41 = vector.extract_strided_slice %37 {offsets = [0, 0], sizes = [16, 1], strides = [1, 1]} : vector<64x1xf32> to vector<16x1xf32>
    %42 = tpu.reciprocal %41 {approx = true} : vector<16x1xf32> -> vector<16x1xf32>
    %43 = vector.broadcast %42 : vector<16x1xf32> to vector<16x32xf32>
    %44 = arith.mulf %40, %43 : vector<16x32xf32>
    %c0_15 = arith.constant 0 : index
    %c0_16 = arith.constant 0 : index
    %45 = vector.load %arg6[%c0_15, %c0_16] : memref<16x128xf32, #tpu.memory_space<vmem>>, vector<16x32xf32>
    tpu.vector_store %arg6[%c0_15, %c0_16], %44 {strides = array<i32>} : memref<16x128xf32, #tpu.memory_space<vmem>>, vector<16x32xf32>,
    %46 = vector.extract_strided_slice %35 {offsets = [16, 0], sizes = [16, 16], strides = [1, 1]} : vector<64x16xf32> to vector<16x16xf32>
    %47 = vector.extract_strided_slice %6 {offsets = [0, 32], sizes = [16, 32], strides = [1, 1]} : vector<16x128xf32> to vector<16x32xf32>
    %cst_17 = arith.constant dense<0.000000e+00> : vector<16x32xf32>
    %48 = tpu.matmul %46, %47, %cst_17 {dimension_numbers = #tpu.dot_dimension_numbers<[1], [0], [0], [1], [0, 0, 1, 1], [], []>} : vector<16x16xf32>, vector<16x32xf32>, vector<16x32xf32> -> vector<16x32xf32>
    %49 = vector.extract_strided_slice %37 {offsets = [16, 0], sizes = [16, 1], strides = [1, 1]} : vector<64x1xf32> to vector<16x1xf32>
    %50 = tpu.reciprocal %49 {approx = true} : vector<16x1xf32> -> vector<16x1xf32>
    %51 = vector.broadcast %50 : vector<16x1xf32> to vector<16x32xf32>
    %52 = arith.mulf %48, %51 : vector<16x32xf32>
    %c0_18 = arith.constant 0 : index
    %c32 = arith.constant 32 : index
    %53 = vector.load %arg6[%c0_18, %c32] : memref<16x128xf32, #tpu.memory_space<vmem>>, vector<16x32xf32>
    tpu.vector_store %arg6[%c0_18, %c32], %52 {strides = array<i32>} : memref<16x128xf32, #tpu.memory_space<vmem>>, vector<16x32xf32>,
    %54 = vector.extract_strided_slice %35 {offsets = [32, 0], sizes = [16, 16], strides = [1, 1]} : vector<64x16xf32> to vector<16x16xf32>
    %55 = vector.extract_strided_slice %6 {offsets = [0, 64], sizes = [16, 32], strides = [1, 1]} : vector<16x128xf32> to vector<16x32xf32>
    %cst_19 = arith.constant dense<0.000000e+00> : vector<16x32xf32>
    %56 = tpu.matmul %54, %55, %cst_19 {dimension_numbers = #tpu.dot_dimension_numbers<[1], [0], [0], [1], [0, 0, 1, 1], [], []>} : vector<16x16xf32>, vector<16x32xf32>, vector<16x32xf32> -> vector<16x32xf32>
    %57 = vector.extract_strided_slice %37 {offsets = [32, 0], sizes = [16, 1], strides = [1, 1]} : vector<64x1xf32> to vector<16x1xf32>
    %58 = tpu.reciprocal %57 {approx = true} : vector<16x1xf32> -> vector<16x1xf32>
    %59 = vector.broadcast %58 : vector<16x1xf32> to vector<16x32xf32>
    %60 = arith.mulf %56, %59 : vector<16x32xf32>
    %c0_20 = arith.constant 0 : index
    %c64 = arith.constant 64 : index
    %61 = vector.load %arg6[%c0_20, %c64] : memref<16x128xf32, #tpu.memory_space<vmem>>, vector<16x32xf32>
    tpu.vector_store %arg6[%c0_20, %c64], %60 {strides = array<i32>} : memref<16x128xf32, #tpu.memory_space<vmem>>, vector<16x32xf32>,
    %62 = vector.extract_strided_slice %35 {offsets = [48, 0], sizes = [16, 16], strides = [1, 1]} : vector<64x16xf32> to vector<16x16xf32>
    %63 = vector.extract_strided_slice %6 {offsets = [0, 96], sizes = [16, 32], strides = [1, 1]} : vector<16x128xf32> to vector<16x32xf32>
    %cst_21 = arith.constant dense<0.000000e+00> : vector<16x32xf32>
    %64 = tpu.matmul %62, %63, %cst_21 {dimension_numbers = #tpu.dot_dimension_numbers<[1], [0], [0], [1], [0, 0, 1, 1], [], []>} : vector<16x16xf32>, vector<16x32xf32>, vector<16x32xf32> -> vector<16x32xf32>
    %65 = vector.extract_strided_slice %37 {offsets = [48, 0], sizes = [16, 1], strides = [1, 1]} : vector<64x1xf32> to vector<16x1xf32>
    %66 = tpu.reciprocal %65 {approx = true} : vector<16x1xf32> -> vector<16x1xf32>
    %67 = vector.broadcast %66 : vector<16x1xf32> to vector<16x32xf32>
    %68 = arith.mulf %64, %67 : vector<16x32xf32>
    %c0_22 = arith.constant 0 : index
    %c96 = arith.constant 96 : index
    %69 = vector.load %arg6[%c0_22, %c96] : memref<16x128xf32, #tpu.memory_space<vmem>>, vector<16x32xf32>
    tpu.vector_store %arg6[%c0_22, %c96], %68 {strides = array<i32>} : memref<16x128xf32, #tpu.memory_space<vmem>>, vector<16x32xf32>,
    %c0_23 = arith.constant 0 : index
    %c0_24 = arith.constant 0 : index
    %70 = vector.load %arg6[%c0_23, %c0_24] : memref<16x128xf32, #tpu.memory_space<vmem>>, vector<16x128xf32>
    %c0_25 = arith.constant 0 : index
    %c0_26 = arith.constant 0 : index
    %71 = vector.load %arg3[%c0_25, %c0_26] : memref<128x128xf32, #tpu.memory_space<vmem>>, vector<128x128xf32>
    %cst_27 = arith.constant dense<0.000000e+00> : vector<16x128xf32>
    %72 = tpu.matmul %70, %71, %cst_27 {dimension_numbers = #tpu.dot_dimension_numbers<[1], [0], [0], [1], [0, 0, 1, 1], [], []>} : vector<16x128xf32>, vector<128x128xf32>, vector<16x128xf32> -> vector<16x128xf32>
    %c0_28 = arith.constant 0 : index
    %c0_29 = arith.constant 0 : index
    %73 = vector.load %arg4[%c0_28, %c0_29] : memref<1x128xf32, #tpu.memory_space<vmem>>, vector<1x128xf32>
    %74 = vector.broadcast %73 : vector<1x128xf32> to vector<16x128xf32>
    %75 = arith.addf %72, %74 : vector<16x128xf32>
    %c0_30 = arith.constant 0 : index
    %c0_31 = arith.constant 0 : index
    %c0_32 = arith.constant 0 : index
    %76 = vector.load %arg5[%c0_30, %c0_31, %c0_32] : memref<1x16x128xf32, #tpu.memory_space<vmem>>, vector<1x16x128xf32>
    %77 = vector.shape_cast %76 : vector<1x16x128xf32> to vector<16x128xf32>
    %78 = vector.shape_cast %75 : vector<16x128xf32> to vector<1x16x128xf32>
    tpu.vector_store %arg5[%c0_30, %c0_31, %c0_32], %78 {strides = array<i32>} : memref<1x16x128xf32, #tpu.memory_space<vmem>>, vector<1x16x128xf32>,
    return
  }
  func.func @transform_0(%arg0: i32) -> (i32, i32, i32) {
    %c0_i32 = arith.constant 0 : i32
    %c0_i32_0 = arith.constant 0 : i32
    %c0_i32_1 = arith.constant 0 : i32
    return %arg0, %c0_i32, %c0_i32_0 : i32, i32, i32
  }
  func.func @transform_1(%arg0: i32) -> (i32, i32) {
    %c0_i32 = arith.constant 0 : i32
    %c0_i32_0 = arith.constant 0 : i32
    %c0_i32_1 = arith.constant 0 : i32
    return %c0_i32, %c0_i32_0 : i32, i32
  }
  func.func @transform_2(%arg0: i32) -> (i32, i32) {
    %c0_i32 = arith.constant 0 : i32
    %c0_i32_0 = arith.constant 0 : i32
    %c0_i32_1 = arith.constant 0 : i32
    return %c0_i32, %c0_i32_0 : i32, i32
  }
  func.func @transform_3(%arg0: i32) -> (i32, i32) {
    %c0_i32 = arith.constant 0 : i32
    %c0_i32_0 = arith.constant 0 : i32
    %c0_i32_1 = arith.constant 0 : i32
    return %c0_i32, %c0_i32_0 : i32, i32
  }
  func.func @transform_4(%arg0: i32) -> (i32, i32, i32) {
    %c0_i32 = arith.constant 0 : i32
    %c0_i32_0 = arith.constant 0 : i32
    %c0_i32_1 = arith.constant 0 : i32
    return %arg0, %c0_i32, %c0_i32_0 : i32, i32, i32
  }
}

</mosaic_0001>

<bundles_post_ra>
// kernel: tpu_custom_call.1
= control target key start
LH: loop header
LB: loop body
LE: loop exit
PB: predicated region body
PF: predicated region fallthrough
CT: control target
= control target key end

     0   :  { %9 = vsyncpa [#allocation4], 0  ;;  %s2340_s0 = inlined_call_operand.hbm [shape: f32[2,16,128], index: 0, kind: input, shape index: {}]   ;;  %s2341_s1 = inlined_call_operand.hbm [shape: f32[128,384], index: 1, kind: input, shape index: {}]   ;;  %s2342_s2 = inlined_call_operand.hbm [shape: f32[128,128], index: 2, kind: input, shape index: {}]   ;;  %s2343_s3 = inlined_call_operand.vmem [shape: f32[1,128], index: 3, kind: input, shape index: {}]   ;;  %s2344_s4 = inlined_call_operand.hbm [shape: f32[2,16,128], index: 4, kind: output, shape index: {}]  }
   0x1   :  { %11 = vsyncpa [#allocation4 + $0x1], 0 }
   0x2   :  { %12 = vsyncpa [#allocation7], 0 }
   0x3   :  { %13 = vsyncpa [#allocation5], 0 }
   0x4   :  { %15 = vsyncpa [#allocation5 + $0x1], 0  ;;  %s2036_s15 = smov 0   ;;  %s2038_s16 = smov 0  }
   0x5   :  { %s2040_s17 = smov 0   ;;  %s2042_s18 = smov 0  }
   0x6 LB: > { %s2057_s19 = sadd.s32 4294967295, %s1995_s18   ;;  %s1499_s20 = sadd.s32 4294967294, %s1995_s18   ;;  %s1995_s18 = sphi %s2042_s18, %s2366_s18   ;;  %s1991_s17 = sphi %s2040_s17, %s2365_s17   ;;  %s1987_s16 = sphi %s2038_s16, %s2364_s16   ;;  %s1983_s15 = sphi %s2036_s15, %s2363_s15  }
   0x7   : > { %p41_p0 = scmp.ne.s32.totalorder %s1987_s16, %s1983_s15  ;;  %p2345_p1 = scmp.eq.s32.totalorder %s2057_s19, 0 }
   0x8   : > { %p134_p3 = scmp.eq.s32.totalorder %s1499_s20, 1  ;;  %p1500_p5 = scmp.ge.s32.totalorder %s1995_s18, 1 }
   0x9   : > { %p2066_p4 = por %p2345_p1, %p41_p0  ;;  %p141_p7 = scmp.lt.s32.totalorder %s1995_s18, 3 }
   0xa   : > { %p2071_p6 = por %p134_p3, %p41_p0  ;;  %s1997_s24 = smov [#allocation6]  }
   0xb   : > { %s2349_s21 = scalar_select %p2066_p4, 1, 0 }
   0xc   : > { %s2350_s22 = scalar_select %p2071_p6, 1, 0 }
   0xd   : > { %p2076_p8 = pnand %p1500_p5, %p141_p7  ;;  %s153_s25 = sshll.u32 %s1997_s24, 4  ;;  %s154_s25 = int_to_ptr.vmem [resolvable:$true] %s153_s25 }
   0xe   : > { %s1998_s27 = smov [#allocation8]   ;;  %s1858_s29 = scalar_lea.vmem %s154_s25, 6144 }
   0xf   : > { %s2351_s23 = scalar_select %p2076_p8, 1, 0 }
  0x10   : > { %p1750_p9 = pneg %p2076_p8  ;;  %s166_s28 = sshll.u32 %s1998_s27, 4  ;;  %s167_s28 = int_to_ptr.vmem [resolvable:$true] %s166_s28 }
  0x11   : > { %p1859_p13 = scmp.ne.s32.totalorder %s154_s25, %s1858_s29  ;;  %p1866_p5 = scmp.lt.s32.totalorder %s154_s25, %s154_s25 }
  0x12   : > { %p2085_p11 = pnand %p1750_p9, %p2345_p1  ;;  %p1867_p7 = scmp.lt.s32.totalorder %s1858_s29, %s1858_s29 }
  0x14   : > { %p1849_p12 = pneg %p2085_p11  ;;  %p1868_p10 = por %p1867_p7, %p1866_p5 }
  0x16   : > { %p1861_p0 = pnand %p1859_p13, %p1849_p12 }
  0x18   : > { %p1862_p3 = pneg %p1861_p0 }
  0x1a   : > { %p1869_p9 = pnand %p1868_p10, %p1862_p3 }
  0x1c   : > { %1872 = shalt.err (!%p1869_p9)
}
  0x1d   : > { %s1999_s30 = smov 384   ;;  %s2000_s5 = smov 24  }
  0x1e   : > { %1753 = dma.hbm_to_vmem [thread:$0]  (!%p2085_p11), %s2341_s1, 6144, %s154_s25, [#allocation7], %s1999_s30, %s1999_s30, %s2000_s5  }
  0x1f   : > { %s1884_s8 = scalar_lea.vmem %s167_s28, 2048  ;;  %p1892_p2 = scmp.lt.s32.totalorder %s167_s28, %s167_s28 }
  0x20   : > { %p1885_p1 = scmp.ne.s32.totalorder %s167_s28, %s1884_s8  ;;  %p1893_p6 = scmp.lt.s32.totalorder %s1884_s8, %s1884_s8 }
  0x22   : > { %p1887_p13 = pnand %p1885_p1, %p1849_p12  ;;  %p1894_p5 = por %p1893_p6, %p1892_p2 }
  0x24   : > { %p1888_p0 = pneg %p1887_p13 }
  0x26   : > { %p1895_p10 = pnand %p1894_p5, %p1888_p0 }
  0x28   : > { %1898 = shalt.err (!%p1895_p10)
}
  0x29   : > { %s2001_s9 = smov 128   ;;  %s2002_s10 = smov 8  }
  0x2a   : > { %1756 = dma.hbm_to_vmem [thread:$0]  (!%p2085_p11), %s2342_s2, 2048, %s167_s28, [#allocation7], %s2001_s9, %s2001_s9, %s2002_s10  }
  0x2b   : > { %s2111_s13 = sadd.s32 1, %s1995_s18   ;;  %s28_s20 = sadd.s32 1, %s1991_s17 }
  0x2c   : > { %s25_s14 = ssub.s32 %s1995_s18, %s2111_s13  ;;  %p35_p2 = scmp.ne.s32.totalorder %s1991_s17, %s1987_s16 }
  0x2d   : > { %p26_p1 = scmp.eq.s32.totalorder %s25_s14, 0  ;;  %p36_p6 = scmp.eq.s32.totalorder %s1995_s18, 0 }
  0x2e   : > { %p2353_p3 = scmp.eq.s32.totalorder %s2057_s19, 1  ;;  %p1767_p9 = scmp.lt.s32.totalorder %s1995_s18, 2 }
  0x2f   : > { %s2120_s24 = scalar_select %p26_p1, %s1991_s17, %s28_s20  }
  0x30   : > { %p37_p12 = por %p36_p6, %p35_p2  ;;  %p2124_p7 = por %p2353_p3, %p35_p2 }
  0x31   : > { %s183_s26 = sand.u32 1, %s1991_s17   ;;  %s1542_s28 = sshll.u32 %s1995_s18, 8 }
  0x32   : > { %s2354_s25 = scalar_select %p2124_p7, 1, 0 }
  0x33   : > { %s1504_s27 = sshll.u32 %s183_s26, 4  ;;  %s2134_s5 = scalar_lea.hbm %s2340_s0, %s1542_s28 }
  0x34   : > { %s187_s6 = scalar_lea.vmem [#allocation3], %s1504_s27  ;;  %p2138_p11 = pnand %p1767_p9, %p37_p12 }
  0x35   : > { %s194_s7 = sshll.u32 %s187_s6, 4  ;;  %s2142_s11 = scalar_lea.sflag [#allocation4], %s183_s26  ;;  %s2136_s7 = int_to_ptr.vmem [resolvable:$true] %s194_s7 }
  0x36   : > { %s1899_s12 = scalar_lea.hbm %s2134_s5, 256  ;;  %p1901_p0 = pneg %p2138_p11 }
  0x37   : > { %p1900_p13 = scmp.ne.s32.totalorder %s2134_s5, %s1899_s12  ;;  %s1904_s27 = scalar_lea.hbm %s2340_s0, 512 }
  0x38   : > { %p1905_p1 = scmp.lt.s32.totalorder %s2134_s5, %s2340_s0  ;;  %p1906_p2 = scmp.lt.s32.totalorder %s1904_s27, %s1899_s12 }
  0x39   : > { %p1902_p5 = pnand %p1901_p0, %p1900_p13 }
  0x3a   : > { %p1907_p6 = por %p1906_p2, %p1905_p1 }
  0x3b   : > { %p1903_p10 = pneg %p1902_p5 }
  0x3d   : > { %p1908_p12 = pnand %p1907_p6, %p1903_p10 }
  0x3f   : > { %1911 = shalt.err (!%p1908_p12)
}
  0x40   : > { %s1912_s26 = scalar_lea.vmem %s2136_s7, 256  ;;  %s2003_s30 = smov [#allocation3]  }
  0x41   : > { %p1913_p3 = scmp.ne.s32.totalorder %s2136_s7, %s1912_s26  ;;  %s1917_s6 = sshll.u32 %s2003_s30, 4  ;;  %s1918_s6 = int_to_ptr.vmem [resolvable:$false] %s1917_s6 }
  0x42   : > { %s1919_s14 = scalar_lea.vmem %s1918_s6, 512  ;;  %p1920_p5 = scmp.lt.s32.totalorder %s2136_s7, %s1918_s6 }
  0x43   : > { %p1915_p9 = pnand %p1913_p3, %p1901_p0  ;;  %p1921_p7 = scmp.lt.s32.totalorder %s1919_s14, %s1912_s26 }
  0x45   : > { %p1916_p13 = pneg %p1915_p9  ;;  %p1922_p4 = por %p1921_p7, %p1920_p5 }
  0x47   : > { %p1923_p8 = pnand %p1922_p4, %p1916_p13 }
  0x49   : > { %1926 = shalt.err (!%p1923_p8)
}
  0x4a   : > { %1760 = dma.hbm_to_vmem [thread:$0]  (!%p2138_p11), %s2134_s5, 256, %s2136_s7, %s2142_s11, %s2001_s9, %s2001_s9, %s2002_s10  }
  0x4b   : > { %p2356_p0 = scmp.ne.s32.totalorder %s2351_s23, 0 }
  0x4c   : > { %s2169_s12 = sand.u32 (!%p2356_p0), 1, %s1987_s16   ;;  %p2357_p4 = scmp.ne.s32.totalorder (!%p2356_p0), %s2349_s21, 0 }
  0x4d   : > { %206 = sbr.rel (%p2356_p0) target bundleno = 1343 (0x53f), region = 36  ;;  %s1508_s20 = sshll.u32 (!%p2356_p0), %s2169_s12, 4 }
  0x4e   : > { %s209_s27 = scalar_lea.sflag (!%p2356_p0), [#allocation4], %s2169_s12  ;;  %s2175_s8 = scalar_lea.vmem (!%p2356_p0), [#allocation3], %s1508_s20 }
  0x52   : > { %1970 = dma.done.wait (%p2357_p4), %s209_s27, 256  }
  0x53   : > { %1972 = vsyncadd (%p2357_p4), %s209_s27, 4294967040  ;;  %p2358_p8 = scmp.eq.s32.totalorder %s2057_s19, 0 }
  0x55   : > { %1974 = dma.done.wait (%p2358_p8), [#allocation7], 8192   ;;  %p2359_p7 = pmov %p2358_p8 }
  0x56   : > { %v2004_v0 = vmov 0.0   ;;  %v293_v1 = vld [vmem:[#allocation6 + $0x170] sm:$0xff]  ;;  %v292_v2 = vld [vmem:[#allocation6 + $0x168] sm:$0xff]  ;;  %v290_v3 = vld [vmem:[#allocation6 + $0x158] sm:$0xff]  ;;  %vm454_vm0 = vcmask 261120   ;;  %s2005_s21 = smov 96  }
  0x57   : > { %1976 = vsyncadd (%p2359_p7), [#allocation7], 4294959104  ;;  %359 = vmatprep.mubr.f32.mxu0 %v2004_v0  ;;  %295 = vmatprep.subr.mxu0 %v293_v1  ;;  %v289_v4 = vld [vmem:[#allocation6 + $0x150] sm:$0xff]  ;;  %v287_v5 = vld [vmem:[#allocation6 + $0x140] sm:$0xff]  ;;  %s2006_s23 = smov 64   ;;  %s2007_s9 = smov 32  }
  0x58   : > { %296 = vmatpush1.msra.mxu0 %v292_v2  ;;  %v286_v6 = vld [vmem:[#allocation6 + $0x138] sm:$0xff]  ;;  %v284_v7 = vld [vmem:[#allocation6 + $0x128] sm:$0xff]  ;;  %v283_v8 = vld [vmem:[#allocation6 + $0x120] sm:$0xff]  ;;  %vm823_vm2 = vcmask 130048   ;;  %vm1084_vm4 = vcmask 523520   ;;  %vm1186_vm5 = vcmask 785920  }
  0x59   : > { %297 = vmatprep.subr.mxu0 %v290_v3  ;;  %v281_v9 = vld [vmem:[#allocation6 + $0x110] sm:$0xff]  ;;  %v280_v10 = vld [vmem:[#allocation6 + $0x108] sm:$0xff]  ;;  %v278_v11 = vld [vmem:[#allocation6 + $0xf8] sm:$0xff]  ;;  %vm1288_vm6 = vcmask 1048320   ;;  %s244_s7 = scalar_lea.vmem [#allocation9], %s1508_s20  ;;  %s1543_s28 = sshll.u32 %s2057_s19, 8 }
  0x5a   : > { %298 = vmatpush1.msra.mxu0 %v289_v4  ;;  %v277_v12 = vld [vmem:[#allocation6 + $0xf0] sm:$0xff]  ;;  %v275_v13 = vld [vmem:[#allocation6 + $0xe0] sm:$0xff]  ;;  %v274_v15 = vld [vmem:[#allocation6 + $0xd8] sm:$0xff]  ;;  %s1407_s11 = sshll.u32 %s244_s7, 4  ;;  %s2297_s30 = scalar_lea.hbm %s2344_s4, %s1543_s28  ;;  %s2292_s11 = int_to_ptr.vmem [resolvable:$true] %s1407_s11 }
  0x5b   : > { %299 = vmatprep.subr.mxu0 %v287_v5  ;;  %v2187_v14 = vld [vmem:[%s2175_s8] sm:$0xff]  ;;  %v294_v16 = vld [vmem:[#allocation6 + $0x178] sm:$0xff]  ;;  %v272_v18 = vld [vmem:[#allocation6 + $0xc8] sm:$0xff]  ;;  %v447_v5 = vlaneseq  ;;  %s1394_s6 = scalar_lea.sflag [#allocation5], %s2169_s12  ;;  %s1927_s14 = scalar_lea.vmem %s2292_s11, 256 }
  0x5c   : > { %300 = vmatpush1.msra.mxu0 %v286_v6  ;;  %v291_v17 = vld [vmem:[#allocation6 + $0x160] sm:$0xff]  ;;  %1644 = vmatprep.mubr.f32.mxu1 %v2187_v14  ;;  %v288_v20 = vld [vmem:[#allocation6 + $0x148] sm:$0xff]  ;;  %v269_v21 = vld [vmem:[#allocation6 + $0xb0] sm:$0xff]  ;;  %p1928_p11 = scmp.ne.s32.totalorder %s2292_s11, %s1927_s14  ;;  %p2360_p10 = scmp.ne.s32.totalorder %s2354_s25, 0 }
  0x5d   : > { %301 = vmatprep.subr.mxu0 %v284_v7  ;;  %1612 = vmatprep.subr.mxu1 %v294_v16  ;;  %v271_v19 = vld [vmem:[#allocation6 + $0xc0] sm:$0xff]  ;;  %v268_v22 = vld [vmem:[#allocation6 + $0xa8] sm:$0xff]  ;;  %v285_v23 = vld [vmem:[#allocation6 + $0x130] sm:$0xff]  ;;  %v448_v6 = vshrl.u32 %v447_v5, 7  ;;  %s2008_s19 = smov [#allocation9]  }
  0x5e   : > { %302 = vmatpush1.msra.mxu0 %v283_v8  ;;  %1613 = vmatpush3.msra.mxu1 %v294_v16  ;;  %v266_v24 = vld [vmem:[#allocation6 + $0x98] sm:$0xff]  ;;  %v265_v25 = vld [vmem:[#allocation6 + $0x90] sm:$0xff]  ;;  %v263_v27 = vld [vmem:[#allocation6 + $0x80] sm:$0xff]  ;;  %v451_v8 = vand.u32 127, %v447_v5  ;;  %p1929_p1 = pnand %p1928_p11, %p2360_p10  ;;  %s1931_s20 = sshll.u32 %s2008_s19, 4  ;;  %s1932_s20 = int_to_ptr.vmem [resolvable:$false] %s1931_s20 }
  0x5f   : > { %303 = vmatprep.subr.mxu0 %v281_v9  ;;  %1614 = vmatprep.subr.mxu1 %v291_v17  ;;  %v282_v26 = vld [vmem:[#allocation6 + $0x118] sm:$0xff]  ;;  %v279_v29 = vld [vmem:[#allocation6 + $0x100] sm:$0xff]  ;;  %v260_v30 = vld [vmem:[#allocation6 + $0x68] sm:$0xff]  ;;  %v449_v7 = vadd.s32 8, %v448_v6  ;;  %s1933_s27 = scalar_lea.vmem %s1932_s20, 512  ;;  %p1934_p6 = scmp.lt.s32.totalorder %s2292_s11, %s1932_s20 }
  0x60   : > { %304 = vmatpush1.msra.mxu0 %v280_v10  ;;  %1615 = vmatpush3.msra.mxu1 %v291_v17  ;;  %v262_v28 = vld [vmem:[#allocation6 + $0x78] sm:$0xff]  ;;  %v259_v31 = vld [vmem:[#allocation6 + $0x60] sm:$0xff]  ;;  %v276_v32 = vld [vmem:[#allocation6 + $0xe8] sm:$0xff]  ;;  %vm452_vm3 = vcmp.ge.s32.totalorder %v448_v6, %v451_v8  ;;  %p1930_p2 = pneg %p1929_p1  ;;  %p1935_p12 = scmp.lt.s32.totalorder %s1933_s27, %s1927_s14 }
  0x61   : > { %305 = vmatprep.subr.mxu0 %v278_v11  ;;  %1616 = vmatprep.subr.mxu1 %v288_v20  ;;  %v257_v33 = vld [vmem:[#allocation6 + $0x50] sm:$0xff]  ;;  %v256_v34 = vld [vmem:[#allocation6 + $0x48] sm:$0xff]  ;;  %v254_v36 = vld [vmem:[#allocation6 + $0x38] sm:$0xff]  ;;  %vm453_vm1 = vcmp.ge.s32.totalorder %v449_v7, %v451_v8 }
  0x62   : > { %306 = vmatpush1.msra.mxu0 %v277_v12  ;;  %1617 = vmatpush3.msra.mxu1 %v288_v20  ;;  %v273_v35 = vld [vmem:[#allocation6 + $0xd0] sm:$0xff]  ;;  %v270_v38 = vld [vmem:[#allocation6 + $0xb8] sm:$0xff]  ;;  %v251_v39 = vld [vmem:[#allocation6 + $0x20] sm:$0xff]  ;;  %p1936_p3 = por %p1935_p12, %p1934_p6 }
  0x63   : > { %307 = vmatprep.subr.mxu0 %v275_v13  ;;  %1618 = vmatprep.subr.mxu1 %v285_v23  ;;  %v253_v37 = vld [vmem:[#allocation6 + $0x30] sm:$0xff]  ;;  %v250_v40 = vld [vmem:[#allocation6 + $0x18] sm:$0xff]  ;;  %v267_v41 = vld [vmem:[#allocation6 + $0xa0] sm:$0xff] }
  0x64   : > { %308 = vmatpush1.msra.mxu0 %v274_v15  ;;  %1619 = vmatpush3.msra.mxu1 %v285_v23  ;;  %v248_v42 = vld [vmem:[#allocation6 + $0x8] sm:$0xff]  ;;  %v247_v43 = vld [vmem:[#allocation6] sm:$0xff]  ;;  %v261_v45 = vld [vmem:[#allocation6 + $0x70] sm:$0xff]  ;;  %p1937_p9 = pnand %p1936_p3, %p1930_p2 }
  0x65   : > { %309 = vmatprep.subr.mxu0 %v272_v18  ;;  %1620 = vmatprep.subr.mxu1 %v282_v26  ;;  %v264_v44 = vld [vmem:[#allocation6 + $0x88] sm:$0xff]  ;;  %v258_v46 = vld [vmem:[#allocation6 + $0x58] sm:$0xff]  ;;  %v255_v48 = vld [vmem:[#allocation6 + $0x40] sm:$0xff] }
  0x66   : > { %310 = vmatpush1.msra.mxu0 %v271_v19  ;;  %1621 = vmatpush3.msra.mxu1 %v282_v26  ;;  %v246_v47 = vld [vmem:[%s2175_s8 + $0x8] sm:$0xff]  ;;  %v249_v50 = vld [vmem:[#allocation6 + $0x10] sm:$0xff] }
  0x67   : > { %311 = vmatprep.subr.mxu0 %v269_v21  ;;  %1622 = vmatprep.subr.mxu1 %v279_v29  ;;  %v252_v49 = vld [vmem:[#allocation6 + $0x28] sm:$0xff] }
  0x68   : > { %312 = vmatpush1.msra.mxu0 %v268_v22  ;;  %1623 = vmatpush3.msra.mxu1 %v279_v29 }
  0x69   : > { %313 = vmatprep.subr.mxu0 %v266_v24  ;;  %1624 = vmatprep.subr.mxu1 %v276_v32 }
  0x6a   : > { %314 = vmatpush1.msra.mxu0 %v265_v25  ;;  %1625 = vmatpush3.msra.mxu1 %v276_v32 }
  0x6b   : > { %315 = vmatprep.subr.mxu0 %v263_v27  ;;  %1626 = vmatprep.subr.mxu1 %v273_v35 }
  0x6c   : > { %316 = vmatpush1.msra.mxu0 %v262_v28  ;;  %1627 = vmatpush3.msra.mxu1 %v273_v35 }
  0x6d   : > { %317 = vmatprep.subr.mxu0 %v260_v30  ;;  %1628 = vmatprep.subr.mxu1 %v270_v38 }
  0x6e   : > { %318 = vmatpush1.msra.mxu0 %v259_v31  ;;  %1629 = vmatpush3.msra.mxu1 %v270_v38 }
  0x6f   : > { %319 = vmatprep.subr.mxu0 %v257_v33  ;;  %1630 = vmatprep.subr.mxu1 %v267_v41 }
  0x70   : > { %320 = vmatpush1.msra.mxu0 %v256_v34  ;;  %1631 = vmatpush3.msra.mxu1 %v267_v41 }
  0x71   : > { %321 = vmatprep.subr.mxu0 %v254_v36  ;;  %1632 = vmatprep.subr.mxu1 %v264_v44 }
  0x72   : > { %322 = vmatpush1.msra.mxu0 %v253_v37  ;;  %1633 = vmatpush3.msra.mxu1 %v264_v44 }
  0x73   : > { %323 = vmatprep.subr.mxu0 %v251_v39  ;;  %1634 = vmatprep.subr.mxu1 %v261_v45 }
  0x74   : > { %324 = vmatpush1.msra.mxu0 %v250_v40  ;;  %1635 = vmatpush3.msra.mxu1 %v261_v45 }
  0x75   : > { %325 = vmatprep.subr.mxu0 %v248_v42  ;;  %1636 = vmatprep.subr.mxu1 %v258_v46 }
  0x76   : > { %326 = vmatpush1.msra.mxu0 %v247_v43  ;;  %1637 = vmatpush3.msra.mxu1 %v258_v46 }
  0x77   : > { %360 = vmatmul.mubr.f32.vlgmr.msra.gmra.mxu0 %v2187_v14  ;;  %1638 = vmatprep.subr.mxu1 %v255_v48 }
  0x78   : > { %365 = vmatprep.mubr.f32.mxu0 %v2004_v0  ;;  %1639 = vmatpush3.msra.mxu1 %v255_v48 }
  0x79   : > { %1640 = vmatprep.subr.mxu1 %v252_v49 }
  0x7a   : > { %1641 = vmatpush3.msra.mxu1 %v252_v49 }
  0x7b   : > { %366 = vmatmul.mubr.f32.gmra.mxu0 %v246_v47  ;;  %1642 = vmatprep.subr.mxu1 %v249_v50 }
  0x7c   : > { %1643 = vmatpush3.msra.mxu1 %v249_v50 }
  0x7d   : > { %1645 = vmatmul.mubr.f32.vlgmr.msra.gmra.mxu1 %v246_v47 }
 0x137   : > { %v361_v51 = vpop.f32.mrf.mxu0 }
 0x138   : > { %544 = vrot.lane.b32.xlu1 %v361_v51, %s2005_s21  ;;  %1651 = vmatprep.mubr.msk.f32.mxu1 %vm454_vm0, %v361_v51 }
 0x139   : > { %v363_v52 = vpop.f32.mrf.mxu0 }
 0x13b   : > { %v367_v53 = vpop.f32.mrf.mxu0 }
 0x13d   : > { %v369_v54 = vpop.f32.mrf.mxu0  ;;  %v1646_v55 = vpop.f32.mrf.mxu1 }
 0x13e   : > { %643 = vrot.lane.b32.xlu1 %v369_v54, %s2006_s23  ;;  %550 = vrot.lane.b32.xlu0 %v369_v54, %s2005_s21 }
 0x13f   : > { %1647 = vmatprep.subr.msk.mxu1 %vm454_vm0, %v369_v54  ;;  %1675 = vmatprep.subr.mxu0 %v1646_v55  ;;  %v2208_v56 = vpop.f32.mrf.mxu1 }
 0x140   : > { %1648 = vmatpush3.xpose.msk.msra.mxu1 %vm454_vm0, %v369_v54  ;;  %1676 = vmatpush3.msra.mxu0 %v1646_v55 }
 0x141   : > { %1649 = vmatprep.subr.msk.mxu1 %vm454_vm0, %v363_v52  ;;  %1677 = vmatprep.subr.mxu0 %v2208_v56 }
 0x142   : > { %641 = vrot.lane.b32.xlu1 %v363_v52, %s2006_s23  ;;  %548 = vrot.lane.b32.xlu0 %v363_v52, %s2005_s21 }
 0x143   : > { %1678 = vmatpush3.msra.mxu0 %v2208_v56 }
 0x144   : > { %1650 = vmatpush3.xpose.msk.msra.mxu1 %vm454_vm0, %v363_v52 }
 0x146   : > { %736 = vrot.lane.b32.xlu1 %v369_v54, %s2007_s9  ;;  %546 = vrot.lane.b32.xlu0 %v367_v53, %s2005_s21 }
 0x147   : > { %1652 = vmatmul.mubr.msk.f32.vlgmr.msra.gmra.mxu1 %vm454_vm0, %v367_v53 }
 0x14a   : > { %734 = vrot.lane.b32.xlu1 %v363_v52, %s2007_s9  ;;  %637 = vrot.lane.b32.xlu0 %v361_v51, %s2006_s23 }
 0x14e   : > { %732 = vrot.lane.b32.xlu1 %v367_v53, %s2007_s9  ;;  %639 = vrot.lane.b32.xlu0 %v367_v53, %s2006_s23 }
 0x152   : > { %730 = vrot.lane.b32.xlu0 %v361_v51, %s2007_s9  ;;  %987 = vrot.lane.b32.xlu1 %v1646_v55, %s2005_s21 }
 0x156   : > { %1089 = vrot.lane.b32.xlu1 %v1646_v55, %s2006_s23  ;;  %985 = vrot.lane.b32.xlu0 %v2208_v56, %s2005_s21 }
 0x15a   : > { %1191 = vrot.lane.b32.xlu1 %v1646_v55, %s2007_s9 }
 0x1aa   : > { %v545_v57 = vpop.permute.xlu1 %544 }
 0x1ab   : > { %1658 = vmatprep.mubr.msk.f32.mxu1 %vm454_vm0, %v545_v57 }
 0x1b0   : > { %v644_v58 = vpop.permute.xlu1 %643  ;;  %v551_v59 = vpop.permute.xlu0 %550 }
 0x1b1   : > { %1654 = vmatprep.subr.msk.mxu1 %vm454_vm0, %v551_v59 }
 0x1b2   : > { %1655 = vmatpush3.xpose.msk.msra.mxu1 %vm454_vm0, %v551_v59 }
 0x1b4   : > { %v549_v60 = vpop.permute.xlu0 %548  ;;  %v642_v61 = vpop.permute.xlu1 %641 }
 0x1b5   : > { %1656 = vmatprep.subr.msk.mxu1 %vm454_vm0, %v549_v60 }
 0x1b6   : > { %1657 = vmatpush3.xpose.msk.msra.mxu1 %vm454_vm0, %v549_v60 }
 0x1b7   : > { %1661 = vmatprep.subr.msk.mxu1 %vm454_vm0, %v644_v58 }
 0x1b8   : > { %v547_v62 = vpop.permute.xlu0 %546  ;;  %v737_v63 = vpop.permute.xlu1 %736 }
 0x1b9   : > { %1659 = vmatmul.mubr.msk.f32.vlgmr.msra.gmra.mxu1 %vm454_vm0, %v547_v62 }
 0x1ba   : > { %1662 = vmatpush3.xpose.msk.msra.mxu1 %vm454_vm0, %v644_v58 }
 0x1bb   : > { %1663 = vmatprep.subr.msk.mxu1 %vm454_vm0, %v642_v61 }
 0x1bc   : > { %v638_v0 = vpop.permute.xlu0 %637  ;;  %v735_v2 = vpop.permute.xlu1 %734 }
 0x1bd   : > { %1665 = vmatprep.mubr.msk.f32.mxu1 %vm454_vm0, %v638_v0 }
 0x1be   : > { %1664 = vmatpush3.xpose.msk.msra.mxu1 %vm454_vm0, %v642_v61 }
 0x1bf   : > { %1668 = vmatprep.subr.msk.mxu1 %vm454_vm0, %v737_v63 }
 0x1c0   : > { %v640_v1 = vpop.permute.xlu0 %639  ;;  %v733_v4 = vpop.permute.xlu1 %732 }
 0x1c1   : > { %1666 = vmatmul.mubr.msk.f32.vlgmr.msra.gmra.mxu1 %vm454_vm0, %v640_v1 }
 0x1c2   : > { %1669 = vmatpush3.xpose.msk.msra.mxu1 %vm454_vm0, %v737_v63 }
 0x1c3   : > { %1670 = vmatprep.subr.msk.mxu1 %vm454_vm0, %v735_v2 }
 0x1c4   : > { %v731_v3 = vpop.permute.xlu0 %730  ;;  %v988_v9 = vpop.permute.xlu1 %987 }
 0x1c5   : > { %1672 = vmatprep.mubr.msk.f32.mxu1 %vm454_vm0, %v731_v3 }
 0x1c6   : > { %1671 = vmatpush3.xpose.msk.msra.mxu1 %vm454_vm0, %v735_v2 }
 0x1c7   : > { %1682 = vmatprep.subr.mxu1 %v988_v9 }
 0x1c8   : > { %v1090_v15 = vpop.permute.xlu1 %1089  ;;  %v986_v17 = vpop.permute.xlu0 %985 }
 0x1c9   : > { %1673 = vmatmul.mubr.msk.f32.vlgmr.msra.gmra.mxu1 %vm454_vm0, %v733_v4  ;;  %1689 = vmatprep.subr.mxu0 %v1090_v15 }
 0x1ca   : > { %1683 = vmatpush3.msra.mxu1 %v988_v9 }
 0x1cb   : > { %1684 = vmatprep.subr.mxu1 %v986_v17 }
 0x1cc   : > { %v2242_v18 = vpop.permute.xlu1 %1191  ;;  %1685 = vmatpush3.msra.mxu1 %v986_v17  ;;  %v1306_v17 = vld [vmem:[#allocation8 + $0x68] sm:$0xff] }
 0x1cd   : > { %1696 = vmatprep.subr.mxu1 %v2242_v18 }
 0x207   : > { %v1653_v10 = vpop.f32.mrf.mxu1 }
 0x208   : > { %v543_v11 = vsel %vm453_vm1, %v1653_v10, -1e+30 }
 0x209   : > { %v533_v12 = vpop.f32.mrf.mxu1  ;;  %v827_v13 = vsel %vm823_vm2, %v543_v11, -inf }
 0x20a   : > { %v542_v14 = vsel %vm452_vm3, %v533_v12, -1e+30  ;;  %828 = vmax.xlane.f32.xlu1 %v827_v13 }
 0x20b   : > { %v824_v16 = vsel %vm823_vm2, %v542_v14, -inf }
 0x20c   : > { %825 = vmax.xlane.f32.xlu0 %v824_v16  ;;  %v1307_v16 = vld [vmem:[#allocation8 + $0x70] sm:$0xff] }
 0x279   : > { %v1660_v19 = vpop.f32.mrf.mxu1 }
 0x27a   : > { %v636_v20 = vsel %vm453_vm1, %v1660_v19, -1e+30 }
 0x27b   : > { %v626_v21 = vpop.f32.mrf.mxu1  ;;  %v833_v22 = vsel %vm823_vm2, %v636_v20, -inf }
 0x27c   : > { %v635_v23 = vsel %vm452_vm3, %v626_v21, -1e+30  ;;  %834 = vmax.xlane.f32.xlu0 %v833_v22 }
 0x27d   : > { %v830_v24 = vsel %vm823_vm2, %v635_v23, -inf }
 0x280   : > { %831 = vmax.xlane.f32.xlu0 %v830_v24 }
 0x281   : > { %v1667_v25 = vpop.f32.mrf.mxu1 }
 0x282   : > { %v729_v26 = vsel %vm453_vm1, %v1667_v25, -1e+30 }
 0x283   : > { %v719_v27 = vpop.f32.mrf.mxu1  ;;  %v839_v28 = vsel %vm823_vm2, %v729_v26, -inf }
 0x284   : > { %v728_v29 = vsel %vm452_vm3, %v719_v27, -1e+30  ;;  %840 = vmax.xlane.f32.xlu0 %v839_v28 }
 0x285   : > { %v836_v30 = vsel %vm823_vm2, %v728_v29, -inf }
 0x286   : > { %837 = vmax.xlane.f32.xlu1 %v836_v30 }
 0x289   : > { %v1674_v31 = vpop.f32.mrf.mxu1 }
 0x28a   : > { %v822_v32 = vsel %vm453_vm1, %v1674_v31, -1e+30 }
 0x28b   : > { %v812_v33 = vpop.f32.mrf.mxu1  ;;  %v845_v34 = vsel %vm823_vm2, %v822_v32, -inf }
 0x28c   : > { %v821_v35 = vsel %vm452_vm3, %v812_v33, -1e+30  ;;  %846 = vmax.xlane.f32.xlu0 %v845_v34  ;;  %v1304_v33 = vld [vmem:[#allocation8 + $0x58] sm:$0xff]  ;;  %v1303_v34 = vld [vmem:[#allocation8 + $0x50] sm:$0xff] }
 0x28d   : > { %v842_v36 = vsel %vm823_vm2, %v821_v35, -inf }
 0x28e   : > { %843 = vmax.xlane.f32.xlu1 %v842_v36  ;;  %v1301_v36 = vld [vmem:[#allocation8 + $0x40] sm:$0xff] }
 0x293   : > { %v829_v37 = vpop.xlane.xlu1 %828 }
 0x294   : > { %v849_v38 = vsub.f32 %v543_v11, %v829_v37  ;;  %v1300_v37 = vld [vmem:[#allocation8 + $0x38] sm:$0xff] }
 0x295   : > { %v826_v39 = vpop.xlane.xlu0 %825 }
 0x296   : > { %v848_v40 = vsub.f32 %v542_v14, %v826_v39  ;;  %v858_v41 = vmul.f32 1.442695, %v849_v38 }
 0x298   : > { %v856_v42 = vmul.f32 1.442695, %v848_v40  ;;  %v1299_v40 = vld [vmem:[#allocation8 + $0x30] sm:$0xff] }
 0x29a   : > { %1815 = vpow2.f32 %v856_v42 }
 0x29b   : > { %1817 = vpow2.f32 %v858_v41  ;;  %v1298_v41 = vld [vmem:[#allocation8 + $0x28] sm:$0xff] }
 0x29f   : > { %1189 = vrot.lane.b32.xlu1 %v2208_v56, %s2007_s9 }
 0x2a2   : > { %1087 = vrot.lane.b32.xlu0 %v2208_v56, %s2006_s23 }
 0x2a7   : > { %v1816_v43 = vpop.eup %1815 }
 0x2a8   : > { %v1818_v44 = vpop.eup %1817  ;;  %1679 = vmatprep.mubr.msk.f32.mxu0 %vm823_vm2, %v1816_v43  ;;  %v872_v14 = vsel %vm823_vm2, %v1816_v43, 0.0 }
 0x2a9   : > { %1680 = vmatmul.mubr.msk.f32.vlgmr.msra.gmra.mxu0 %vm823_vm2, %v1818_v44  ;;  %v875_v13 = vsel %vm823_vm2, %v1818_v44, 0.0 }
 0x2aa   : > { %1690 = vmatpush3.msra.mxu0 %v1090_v15  ;;  %v1308_v15 = vld [vmem:[#allocation8 + $0x78] sm:$0xff] }
 0x305   : > { %v835_v45 = vpop.xlane.xlu0 %834 }
 0x306   : > { %v851_v46 = vsub.f32 %v636_v20, %v835_v45 }
 0x308   : > { %v862_v47 = vmul.f32 1.442695, %v851_v46  ;;  %v1297_v46 = vld [vmem:[#allocation8 + $0x20] sm:$0xff] }
 0x309   : > { %v832_v48 = vpop.xlane.xlu0 %831 }
 0x30a   : > { %1819 = vpow2.f32 %v862_v47  ;;  %v850_v49 = vsub.f32 %v635_v23, %v832_v48 }
 0x30c   : > { %v860_v50 = vmul.f32 1.442695, %v850_v49  ;;  %v1296_v49 = vld [vmem:[#allocation8 + $0x18] sm:$0xff] }
 0x30d   : > { %v841_v51 = vpop.xlane.xlu0 %840 }
 0x30e   : > { %1821 = vpow2.f32 %v860_v50  ;;  %v853_v52 = vsub.f32 %v729_v26, %v841_v51  ;;  %v1295_v50 = vld [vmem:[#allocation8 + $0x10] sm:$0xff] }
 0x30f   : > { %v838_v53 = vpop.xlane.xlu1 %837 }
 0x310   : > { %v866_v54 = vmul.f32 1.442695, %v853_v52  ;;  %v852_v55 = vsub.f32 %v728_v29, %v838_v53  ;;  %v1294_v53 = vld [vmem:[#allocation8 + $0x8] sm:$0xff] }
 0x312   : > { %1823 = vpow2.f32 %v866_v54  ;;  %v864_v56 = vmul.f32 1.442695, %v852_v55  ;;  %v1293_v55 = vld [vmem:[#allocation8] sm:$0xff] }
 0x314   : > { %1825 = vpow2.f32 %v864_v56 }
 0x315   : > { %v847_v57 = vpop.xlane.xlu0 %846 }
 0x316   : > { %v855_v58 = vsub.f32 %v822_v32, %v847_v57 }
 0x317   : > { %v1820_v59 = vpop.eup %1819  ;;  %v844_v60 = vpop.xlane.xlu1 %843 }
 0x318   : > { %v870_v61 = vmul.f32 1.442695, %v855_v58  ;;  %v854_v62 = vsub.f32 %v821_v35, %v844_v60  ;;  %v881_v63 = vsel %vm823_vm2, %v1820_v59, 0.0  ;;  %v1302_v35 = vld [vmem:[#allocation8 + $0x48] sm:$0xff] }
 0x319   : > { %882 = vadd.xlane.f32.xlu1 %v881_v63  ;;  %v1088_v0 = vpop.permute.xlu0 %1087 }
 0x31a   : > { %1827 = vpow2.f32 %v870_v61  ;;  %v868_v1 = vmul.f32 1.442695, %v854_v62  ;;  %1691 = vmatprep.subr.mxu0 %v1088_v0 }
 0x31b   : > { %v1822_v2 = vpop.eup %1821  ;;  %1692 = vmatpush3.msra.mxu0 %v1088_v0  ;;  %v1190_v4 = vpop.permute.xlu1 %1189 }
 0x31c   : > { %1829 = vpow2.f32 %v868_v1  ;;  %1686 = vmatprep.mubr.msk.f32.mxu1 %vm823_vm2, %v1822_v2  ;;  %v878_v3 = vsel %vm823_vm2, %v1822_v2, 0.0  ;;  %1703 = vmatprep.subr.mxu0 %v1308_v15 }
 0x31d   : > { %1687 = vmatmul.mubr.msk.f32.vlgmr.msra.gmra.mxu1 %vm823_vm2, %v1820_v59  ;;  %879 = vadd.xlane.f32.xlu0 %v878_v3 }
 0x31e   : > { %1697 = vmatpush3.msra.mxu1 %v2242_v18  ;;  %v1305_v18 = vld [vmem:[#allocation8 + $0x60] sm:$0xff] }
 0x31f   : > { %v1824_v5 = vpop.eup %1823  ;;  %1698 = vmatprep.subr.mxu1 %v1190_v4 }
 0x320   : > { %1699 = vmatpush3.msra.mxu1 %v1190_v4  ;;  %v887_v6 = vsel %vm823_vm2, %v1824_v5, 0.0 }
 0x321   : > { %v1826_v7 = vpop.eup %1825  ;;  %888 = vadd.xlane.f32.xlu0 %v887_v6 }
 0x322   : > { %1693 = vmatprep.mubr.msk.f32.mxu0 %vm823_vm2, %v1826_v7  ;;  %v884_v8 = vsel %vm823_vm2, %v1826_v7, 0.0  ;;  %v1536_v7 = vld [vmem:[%s2343_s3] ss:$0 sm:$0xff] }
 0x323   : > { %1694 = vmatmul.mubr.msk.f32.vlgmr.msra.gmra.mxu0 %vm823_vm2, %v1824_v5 }
 0x324   : > { %1704 = vmatpush3.msra.mxu0 %v1308_v15 }
 0x325   : > { %885 = vadd.xlane.f32.xlu0 %v884_v8  ;;  %1705 = vmatprep.subr.mxu0 %v1307_v16 }
 0x326   : > { %1706 = vmatpush3.msra.mxu0 %v1307_v16 }
 0x327   : > { %v1828_v9 = vpop.eup %1827  ;;  %1707 = vmatprep.subr.mxu0 %v1306_v17 }
 0x328   : > { %v893_v10 = vsel %vm823_vm2, %v1828_v9, 0.0  ;;  %1708 = vmatpush3.msra.mxu0 %v1306_v17 }
 0x329   : > { %v1830_v11 = vpop.eup %1829  ;;  %894 = vadd.xlane.f32.xlu0 %v893_v10  ;;  %1709 = vmatprep.subr.mxu0 %v1305_v18 }
 0x32a   : > { %1700 = vmatprep.mubr.msk.f32.mxu1 %vm823_vm2, %v1830_v11  ;;  %v890_v12 = vsel %vm823_vm2, %v1830_v11, 0.0  ;;  %1710 = vmatpush3.msra.mxu0 %v1305_v18 }
 0x32b   : > { %891 = vadd.xlane.f32.xlu1 %v890_v12  ;;  %1701 = vmatmul.mubr.msk.f32.vlgmr.msra.gmra.mxu1 %vm823_vm2, %v1828_v9 }
 0x32c   : > { %1711 = vmatprep.subr.mxu0 %v1304_v33 }
 0x32d   : > { %876 = vadd.xlane.f32.xlu0 %v875_v13  ;;  %1712 = vmatpush3.msra.mxu0 %v1304_v33 }
 0x32e   : > { %1713 = vmatprep.subr.mxu0 %v1303_v34 }
 0x32f   : > { %873 = vadd.xlane.f32.xlu1 %v872_v14  ;;  %1714 = vmatpush3.msra.mxu0 %v1303_v34 }
 0x330   : > { %1715 = vmatprep.subr.mxu0 %v1302_v35 }
 0x331   : > { %1716 = vmatpush3.msra.mxu0 %v1302_v35 }
 0x332   : > { %1717 = vmatprep.subr.mxu0 %v1301_v36 }
 0x333   : > { %1718 = vmatpush3.msra.mxu0 %v1301_v36 }
 0x334   : > { %1719 = vmatprep.subr.mxu0 %v1300_v37 }
 0x335   : > { %1720 = vmatpush3.msra.mxu0 %v1300_v37 }
 0x336   : > { %1721 = vmatprep.subr.mxu0 %v1299_v40 }
 0x337   : > { %1722 = vmatpush3.msra.mxu0 %v1299_v40 }
 0x338   : > { %1723 = vmatprep.subr.mxu0 %v1298_v41 }
 0x339   : > { %1724 = vmatpush3.msra.mxu0 %v1298_v41 }
 0x33a   : > { %1725 = vmatprep.subr.mxu0 %v1297_v46 }
 0x33b   : > { %1726 = vmatpush3.msra.mxu0 %v1297_v46 }
 0x33c   : > { %1727 = vmatprep.subr.mxu0 %v1296_v49 }
 0x33d   : > { %1728 = vmatpush3.msra.mxu0 %v1296_v49 }
 0x33e   : > { %1729 = vmatprep.subr.mxu0 %v1295_v50 }
 0x33f   : > { %1730 = vmatpush3.msra.mxu0 %v1295_v50 }
 0x340   : > { %1731 = vmatprep.subr.mxu0 %v1294_v53 }
 0x341   : > { %1732 = vmatpush3.msra.mxu0 %v1294_v53 }
 0x342   : > { %1733 = vmatprep.subr.mxu0 %v1293_v55 }
 0x343   : > { %1734 = vmatpush3.msra.mxu0 %v1293_v55 }
 0x369   : > { %v1681_v27 = vpop.f32.mrf.mxu0 }
 0x36b   : > { %v968_v31 = vpop.f32.mrf.mxu0 }
 0x3a2   : > { %v883_v22 = vpop.xlane.xlu1 %882 }
 0x3a6   : > { %v880_v19 = vpop.xlane.xlu0 %879 }
 0x3aa   : > { %v889_v20 = vpop.xlane.xlu0 %888 }
 0x3ae   : > { %v886_v21 = vpop.xlane.xlu0 %885 }
 0x3b2   : > { %v895_v23 = vpop.xlane.xlu0 %894 }
 0x3b4   : > { %v892_v24 = vpop.xlane.xlu1 %891 }
 0x3b6   : > { %v877_v25 = vpop.xlane.xlu0 %876 }
 0x3b7   : > { %1831 = vrcp.f32 %v877_v25 }
 0x3b8   : > { %v874_v26 = vpop.xlane.xlu1 %873 }
 0x3b9   : > { %1833 = vrcp.f32 %v874_v26 }
 0x3ba   : > { %1835 = vrcp.f32 %v883_v22 }
 0x3bb   : > { %1837 = vrcp.f32 %v880_v19 }
 0x3bc   : > { %1839 = vrcp.f32 %v889_v20 }
 0x3bd   : > { %1841 = vrcp.f32 %v886_v21 }
 0x3be   : > { %1843 = vrcp.f32 %v895_v23 }
 0x3bf   : > { %1845 = vrcp.f32 %v892_v24 }
 0x3c4   : > { %v1832_v28 = vpop.eup %1831 }
 0x3c5   : > { %v980_v29 = vmul.f32 %v1832_v28, %v1681_v27 }
 0x3c6   : > { %v1834_v30 = vpop.eup %1833 }
 0x3c7   : > { %982 = vst.msk [vmem:[#allocation2 + $0x8] sm:$0xff] %vm454_vm0, %v980_v29  ;;  %v979_v32 = vmul.f32 %v1834_v30, %v968_v31  ;;  %v1836_v38 = vpop.eup %1835 }
 0x3c8   : > { %v1838_v43 = vpop.eup %1837 }
 0x3c9   : > { %981 = vst.msk [vmem:[#allocation2] sm:$0xff] %vm454_vm0, %v979_v32  ;;  %v1840_v47 = vpop.eup %1839 }
 0x3ca   : > { %v1842_v54 = vpop.eup %1841 }
 0x3cb   : > { %v1844_v57 = vpop.eup %1843 }
 0x3cc   : > { %v1846_v60 = vpop.eup %1845 }
 0x3dd   : > { %v1688_v39 = vpop.f32.mrf.mxu1 }
 0x3de   : > { %v1075_v42 = vmul.f32 %v1836_v38, %v1688_v39 }
 0x3df   : > { %v1063_v44 = vpop.f32.mrf.mxu1 }
 0x3e0   : > { %v1074_v45 = vmul.f32 %v1838_v43, %v1063_v44  ;;  %1080 = vrot.lane.b32.xlu0 %v1075_v42, %s2007_s9 }
 0x3e2   : > { %1078 = vrot.lane.b32.xlu1 %v1074_v45, %s2007_s9 }
 0x3e3   : > { %v1695_v48 = vpop.f32.mrf.mxu0 }
 0x3e4   : > { %v1177_v51 = vmul.f32 %v1840_v47, %v1695_v48 }
 0x3e5   : > { %v1165_v52 = vpop.f32.mrf.mxu0 }
 0x3e6   : > { %1182 = vrot.lane.b32.xlu1 %v1177_v51, %s2006_s23  ;;  %v1176_v56 = vmul.f32 %v1842_v54, %v1165_v52 }
 0x3ea   : > { %1180 = vrot.lane.b32.xlu1 %v1176_v56, %s2006_s23 }
 0x3eb   : > { %v1702_v58 = vpop.f32.mrf.mxu1 }
 0x3ec   : > { %v1279_v59 = vmul.f32 %v1844_v57, %v1702_v58 }
 0x3ed   : > { %v1267_v61 = vpop.f32.mrf.mxu1 }
 0x3ee   : > { %v1278_v62 = vmul.f32 %v1846_v60, %v1267_v61  ;;  %1284 = vrot.lane.b32.xlu1 %v1279_v59, %s2005_s21 }
 0x3f0   : > { %1282 = vrot.lane.b32.xlu0 %v1278_v62, %s2005_s21 }
 0x452   : > { %v1081_v63 = vpop.permute.xlu0 %1080 }
 0x453   : > { %1086 = vst.msk [vmem:[#allocation2 + $0x8] sm:$0xff] %vm1084_vm4, %v1081_v63 }
 0x454   : > { %v1079_v0 = vpop.permute.xlu1 %1078 }
 0x455   : > { %1085 = vst.msk [vmem:[#allocation2] sm:$0xff] %vm1084_vm4, %v1079_v0 }
 0x458   : > { %v1183_v1 = vpop.permute.xlu1 %1182 }
 0x459   : > { %1188 = vst.msk [vmem:[#allocation2 + $0x8] sm:$0xff] %vm1186_vm5, %v1183_v1 }
 0x45c   : > { %v1181_v2 = vpop.permute.xlu1 %1180 }
 0x45d   : > { %1187 = vst.msk [vmem:[#allocation2] sm:$0xff] %vm1186_vm5, %v1181_v2 }
 0x460   : > { %v1285_v3 = vpop.permute.xlu1 %1284 }
 0x461   : > { %1290 = vst.msk [vmem:[#allocation2 + $0x8] sm:$0xff] %vm1288_vm6, %v1285_v3 }
 0x462   : > { %v1283_v4 = vpop.permute.xlu0 %1282 }
 0x463   : > { %1289 = vst.msk [vmem:[#allocation2] sm:$0xff] %vm1288_vm6, %v1283_v4 }
 0x468   : > { %v1292_v6 = vld [vmem:[#allocation2 + $0x8] sm:$0xff] }
 0x46a   : > { %v1291_v5 = vld [vmem:[#allocation2] sm:$0xff] }
 0x46b   : > { %1735 = vmatprep.mubr.f32.mxu0 %v1291_v5 }
 0x46c   : > { %1736 = vmatmul.mubr.f32.vlgmr.msra.gmra.mxu0 %v1292_v6 }
 0x52c   : > { %v1737_v8 = vpop.f32.mrf.mxu0 }
 0x52d   : > { %v1388_v9 = vadd.f32 %v1737_v8, %v1536_v7 }
 0x52e   : > { %v1382_v10 = vpop.f32.mrf.mxu0 }
 0x52f   : > { %1392 = vst [vmem:[%s244_s7 + $0x8] sm:$0xff] %v1388_v9  ;;  %v1383_v11 = vadd.f32 %v1536_v7, %v1382_v10 }
 0x531   : > { %1391 = vst [vmem:[%s244_s7] sm:$0xff] %v1383_v11 }
 0x532   : > { %1940 = shalt.err (!%p1937_p9)
}
 0x533   : > { %s1941_s8 = scalar_lea.hbm %s2297_s30, 256  ;;  %s1945_s9 = scalar_lea.hbm %s2344_s4, 512 }
 0x534   : > { %p1942_p13 = scmp.ne.s32.totalorder %s2297_s30, %s1941_s8  ;;  %p1946_p4 = scmp.lt.s32.totalorder %s2297_s30, %s2344_s4 }
 0x535   : > { %p1947_p8 = scmp.lt.s32.totalorder %s1945_s9, %s1941_s8 }
 0x536   : > { %p1943_p5 = pnand %p1942_p13, %p2360_p10 }
 0x537   : > { %p1948_p7 = por %p1947_p8, %p1946_p4 }
 0x538   : > { %p1944_p0 = pneg %p1943_p5 }
 0x53a   : > { %p1949_p11 = pnand %p1948_p7, %p1944_p0 }
 0x53c   : > { %1952 = shalt.err (!%p1949_p11)
}
 0x53d   : > { %s2009_s7 = smov 128   ;;  %s2010_s28 = smov 8  }
 0x53e   : > { %1748 = dma.vmem_to_hbm [thread:$0]  (%p2360_p10), %s2292_s11, 256, %s2297_s30, %s1394_s6, %s2009_s7, %s2009_s7, %s2010_s28  }
 0x53f PF: > { %s1422_s29 = sand.u32 1, %s1983_s15   ;;  %p2361_p1 = scmp.ne.s32.totalorder %s2350_s22, 0 }
 0x540   : > { %p2362_p2 = scmp.ge.s32.totalorder %s1995_s18, 2  ;;  %s1423_s26 = scalar_lea.sflag [#allocation5], %s1422_s29 }
 0x542   : > { %p1762_p6 = pnand %p2362_p2, %p2361_p1 }
 0x544   : > { %p1763_p12 = pneg %p1762_p6 }
 0x546   : > { %1978 = dma.done.wait (%p1763_p12), %s1423_s26, 256  }
 0x547   : > { %1980 = vsyncadd (%p1763_p12), %s1423_s26, 4294967040  ;;  %p18_p3 = scmp.ge.s32.totalorder %s2111_s13, 4   ;;  %s2363_s15 = smov %s1987_s16 }
 0x548   : > { %s2364_s16 = smov %s1991_s17  ;;  %s2365_s17 = smov %s2120_s24 }
 0x549   : > { %s2366_s18 = smov %s2111_s13  ;;  %20 = sbr.rel (!%p18_p3) target bundleno = 6 (0x6), region = 89 }
 0x54e   :  { %1428 = vsyncpa [#allocation4], 1 }
 0x54f   :  { %1430 = vsyncpa [#allocation4 + $0x1], 1 }
 0x550   :  { %1431 = vsyncpa [#allocation7], 1 }
 0x551   :  { %1432 = vsyncpa [#allocation5], 1 }
 0x552   :  { %1434 = vsyncpa [#allocation5 + $0x1], 1 }

</bundles_post_ra>
